<compile_context>
chip_gen: v7x
topology: tpu7x:2x2x1
jax: 0.10.0
libtpu: 0.0.40
codegen_flags: <defaults>
</compile_context>

<pallas_src>
import functools

import jax
import jax.numpy as jnp
from jax.experimental import pallas as pl
from jax.experimental.pallas import tpu as pltpu


_VMEM_LIMIT = 48 * 1024 * 1024          # <= v7x 64 MiB physical; fine on v5e/v6e
_VMEM_TILE_BUDGET = int(0.85 * _VMEM_LIMIT)


def _round_up(x: int, m: int) -> int:
    return (x + m - 1) // m * m


def autoencoder_kernel(x_ref, w1_ref, b1_ref, w23_ref, b23_ref,
                       w4_ref, b4_ref, o_ref):
    """One (TB, D) batch tile: 3 matmuls + 2 ReLUs, f32 accumulation."""
    x = x_ref[...].astype(jnp.float32)

    # encoder Linear(D, 32) -> ReLU
    h1 = jnp.dot(x, w1_ref[...], preferred_element_type=jnp.float32) + b1_ref[...]
    h1 = jnp.maximum(h1, 0.0)

    # fused Linear(32, 10) @ Linear(10, 32) (no nonlinearity in between) -> ReLU
    h2 = jnp.dot(h1, w23_ref[...], preferred_element_type=jnp.float32) + b23_ref[...]
    h2 = jnp.maximum(h2, 0.0)

    # decoder Linear(32, D)
    y = jnp.dot(h2, w4_ref[...], preferred_element_type=jnp.float32) + b4_ref[...]

    o_ref[...] = y.astype(o_ref.dtype)


def init_linear(key, in_dim, out_dim, dtype=jnp.float32):
    """PyTorch nn.Linear default init: U(-1/sqrt(in), 1/sqrt(in)).
    Weight returned transposed to (in, out); bias as (1, out)."""
    kw, kb = jax.random.split(key)
    bound = 1.0 / (in_dim ** 0.5)
    w = jax.random.uniform(kw, (in_dim, out_dim), dtype, -bound, bound)
    b = jax.random.uniform(kb, (1, out_dim), dtype, -bound, bound)
    return w, b


def make_autoencoder_params(key, img_shape):
    C, H, W = img_shape
    D = C * H * W
    k1, k2, k3, k4 = jax.random.split(key, 4)
    w1, b1 = init_linear(k1, D, 32)    # encoder[0]
    w2, b2 = init_linear(k2, 32, 10)   # encoder[2]
    w3, b3 = init_linear(k3, 10, 32)   # decoder[0]
    w4, b4 = init_linear(k4, 32, D)    # decoder[2]
    return (w1, b1, w2, b2, w3, b3, w4, b4)


def _choose_tb(B: int, D: int, tb: int, weight_bytes: int) -> int:
    """Largest batch-tile s.t. double-buffered (x, out) tiles + resident
    weights fit the VMEM budget, keeping >= 2 grid steps for v7x megacore and
    respecting the (8, 128) sublane tiling rule."""
    bytes_per_row = 2 * 2 * D * 4               # 2 buffers x (x tile + out tile) x f32
    tb_vmem = max(8, (_VMEM_TILE_BUDGET - weight_bytes) // bytes_per_row)
    TB = min(tb, B, tb_vmem)
    if B > 8:
        # Keep at least 2 grid steps so dimension_semantics=("parallel",)
        # actually shards across v7x's two TensorCores.
        TB = min(TB, _round_up(pl.cdiv(B, 2), 8))
    if TB >= B:
        return B                                # full-extent sublane dim is legal
    TB = max(8, (TB // 8) * 8)                  # multiple of 8 for (8, 128) rule
    return B if TB >= B else TB


@functools.partial(jax.jit, static_argnames=("tb",))
def autoencoder_forward(x_nchw, params, *, tb=2048):
    B, C, H, W = x_nchw.shape
    D = C * H * W
    x = x_nchw.reshape(B, D)                            # nn.Flatten (no copy)

    w1, b1, w2, b2, w3, b3, w4, b4 = params

    # Exact algebraic fusion of the two middle linears (no ReLU between them):
    #   (h1 @ w2 + b2) @ w3 + b3  ==  h1 @ (w2 @ w3) + (b2 @ w3 + b3)
    w23 = jnp.dot(w2, w3, preferred_element_type=jnp.float32)        # (32, 32)
    b23 = jnp.dot(b2, w3, preferred_element_type=jnp.float32) + b3   # (1, 32)

    # VMEM accounting (resident weights are double-buffered by default).
    weight_elems = (D * 32 + 32) + (32 * 32 + 32) + (32 * D + D)
    weight_bytes = 2 * 4 * weight_elems + 64 * 1024     # +slack for (8,128) padding

    TB = _choose_tb(B, D, tb, weight_bytes)
    tile_bytes = 2 * 2 * TB * D * 4
    assert tile_bytes + weight_bytes <= _VMEM_LIMIT, (
        f"VMEM budget exceeded: tiles={tile_bytes} + weights={weight_bytes} "
        f"> {_VMEM_LIMIT}; D={D} needs a D-axis grid (see TODO).")

    # Ragged final batch block is masked by Pallas: no HBM pad / slice passes.
    grid = (pl.cdiv(B, TB),)

    x_spec = pl.BlockSpec((TB, D), lambda i: (i, 0))
    out_spec = pl.BlockSpec((TB, D), lambda i: (i, 0))
    # Weights/biases: full-array blocks, constant index_map -> VMEM-resident.
    resident = lambda arr: pl.BlockSpec(arr.shape, lambda i: (0, 0))

    flops = 2 * B * (D * 32 + 32 * 32 + 32 * D)
    bytes_accessed = 4 * (2 * B * D + weight_elems)

    out_flat = pl.pallas_call(
        autoencoder_kernel,
        out_shape=jax.ShapeDtypeStruct((B, D), x.dtype),
        grid=grid,
        in_specs=[
            x_spec,
            resident(w1), resident(b1),
            resident(w23), resident(b23),
            resident(w4), resident(b4),
        ],
        out_specs=out_spec,
        compiler_params=pltpu.CompilerParams(
            dimension_semantics=("parallel",),
            vmem_limit_bytes=_VMEM_LIMIT,
        ),
        cost_estimate=pl.CostEstimate(
            flops=flops, transcendentals=0, bytes_accessed=bytes_accessed),
    )(x, w1, b1, w23, b23, w4, b4)

    return out_flat.reshape(B, C, H, W)                 # nn.Unflatten


def autoencoder_forward_ref(x_nchw, params):
    """Pure-JAX reference (unfused, matches PyTorch layer-by-layer)."""
    B, C, H, W = x_nchw.shape
    w1, b1, w2, b2, w3, b3, w4, b4 = params
    x = x_nchw.reshape(B, C * H * W)
    h1 = jnp.maximum(x @ w1 + b1, 0.0)
    z = h1 @ w2 + b2
    h2 = jnp.maximum(z @ w3 + b3, 0.0)
    y = h2 @ w4 + b4
    return y.reshape(B, C, H, W)


def _run_case(key, img_shape, batch, tb=2048):
    k_x, k_p = jax.random.split(key)
    C, H, W = img_shape
    x = jax.random.normal(k_x, (batch, C, H, W), dtype=jnp.float32)
    params = make_autoencoder_params(k_p, img_shape)
    out = jax.block_until_ready(autoencoder_forward(x, params, tb=tb))
    ref = autoencoder_forward_ref(x, params)
    assert out.shape == (batch, C, H, W)
    assert jnp.allclose(out, ref, atol=1e-4, rtol=1e-4), (
        f"mismatch vs reference for img_shape={img_shape}, batch={batch}")


if __name__ == "__main__":
    key = jax.random.PRNGKey(0)
    k1, k2 = jax.random.split(key)

    # Primary small case: batch=2, (C,H,W)=(4,16,16) -> D=1024, single block.
    _run_case(k1, img_shape=(4, 16, 16), batch=2)

    # Ragged case: D=300 (not a multiple of 128), B=20 with TB=16 -> 2 grid
    # steps, masked final batch block -- exercises the no-padding path.
    _run_case(k2, img_shape=(3, 10, 10), batch=20)

    print("KERNEL_OK")
</pallas_src>

<mosaic_0001>
module attributes {stable_mosaic.version = 11 : i64} {
  func.func @autoencoder_kernel(%arg0: i32, %arg1: memref<2x1024xf32, #tpu.memory_space<vmem>>, %arg2: memref<1024x32xf32, #tpu.memory_space<vmem>>, %arg3: memref<1x32xf32, #tpu.memory_space<vmem>>, %arg4: memref<32x32xf32, #tpu.memory_space<vmem>>, %arg5: memref<1x32xf32, #tpu.memory_space<vmem>>, %arg6: memref<32x1024xf32, #tpu.memory_space<vmem>>, %arg7: memref<1x1024xf32, #tpu.memory_space<vmem>>, %arg8: memref<2x1024xf32, #tpu.memory_space<vmem>>) attributes {dimension_semantics = [#tpu.dimension_semantics<parallel>], iteration_bounds = array<i64: 1>, scalar_prefetch = 0 : i64, scratch_operands = 0 : i64, tpu.core_type = #tpu.core_type<tc>, window_params = [{transform_indices = @transform_0, window_bounds = array<i64: 2, 1024>}, {pipeline_mode = #tpu.pipeline_mode<synchronous>, transform_indices = @transform_1, window_bounds = array<i64: 1024, 32>}, {pipeline_mode = #tpu.pipeline_mode<synchronous>, transform_indices = @transform_2, window_bounds = array<i64: 1, 32>}, {pipeline_mode = #tpu.pipeline_mode<synchronous>, transform_indices = @transform_3, window_bounds = array<i64: 32, 32>}, {pipeline_mode = #tpu.pipeline_mode<synchronous>, transform_indices = @transform_4, window_bounds = array<i64: 1, 32>}, {pipeline_mode = #tpu.pipeline_mode<synchronous>, transform_indices = @transform_5, window_bounds = array<i64: 32, 1024>}, {pipeline_mode = #tpu.pipeline_mode<synchronous>, transform_indices = @transform_6, window_bounds = array<i64: 1, 1024>}, {transform_indices = @transform_7, window_bounds = array<i64: 2, 1024>}]} {
    %c0 = arith.constant 0 : index
    %c0_0 = arith.constant 0 : index
    %0 = vector.load %arg1[%c0, %c0_0] : memref<2x1024xf32, #tpu.memory_space<vmem>>, vector<2x1024xf32>
    %c0_1 = arith.constant 0 : index
    %c0_2 = arith.constant 0 : index
    %1 = vector.load %arg2[%c0_1, %c0_2] : memref<1024x32xf32, #tpu.memory_space<vmem>>, vector<1024x32xf32>
    %cst = arith.constant dense<0.000000e+00> : vector<2x32xf32>
    %2 = tpu.matmul %0, %1, %cst {dimension_numbers = #tpu.dot_dimension_numbers<[1], [0], [0], [1], [0, 0, 1, 1], [], []>} : vector<2x1024xf32>, vector<1024x32xf32>, vector<2x32xf32> -> vector<2x32xf32>
    %c0_3 = arith.constant 0 : index
    %c0_4 = arith.constant 0 : index
    %3 = vector.load %arg3[%c0_3, %c0_4] : memref<1x32xf32, #tpu.memory_space<vmem>>, vector<1x32xf32>
    %4 = vector.broadcast %3 : vector<1x32xf32> to vector<2x32xf32>
    %5 = arith.addf %2, %4 : vector<2x32xf32>
    %cst_5 = arith.constant 0.000000e+00 : f32
    %6 = vector.broadcast %cst_5 : f32 to vector<2x32xf32>
    %7 = arith.maximumf %5, %6 : vector<2x32xf32>
    %c0_6 = arith.constant 0 : index
    %c0_7 = arith.constant 0 : index
    %8 = vector.load %arg4[%c0_6, %c0_7] : memref<32x32xf32, #tpu.memory_space<vmem>>, vector<32x32xf32>
    %cst_8 = arith.constant dense<0.000000e+00> : vector<2x32xf32>
    %9 = tpu.matmul %7, %8, %cst_8 {dimension_numbers = #tpu.dot_dimension_numbers<[1], [0], [0], [1], [0, 0, 1, 1], [], []>} : vector<2x32xf32>, vector<32x32xf32>, vector<2x32xf32> -> vector<2x32xf32>
    %c0_9 = arith.constant 0 : index
    %c0_10 = arith.constant 0 : index
    %10 = vector.load %arg5[%c0_9, %c0_10] : memref<1x32xf32, #tpu.memory_space<vmem>>, vector<1x32xf32>
    %11 = vector.broadcast %10 : vector<1x32xf32> to vector<2x32xf32>
    %12 = arith.addf %9, %11 : vector<2x32xf32>
    %cst_11 = arith.constant 0.000000e+00 : f32
    %13 = vector.broadcast %cst_11 : f32 to vector<2x32xf32>
    %14 = arith.maximumf %12, %13 : vector<2x32xf32>
    %c0_12 = arith.constant 0 : index
    %c0_13 = arith.constant 0 : index
    %15 = vector.load %arg6[%c0_12, %c0_13] : memref<32x1024xf32, #tpu.memory_space<vmem>>, vector<32x1024xf32>
    %cst_14 = arith.constant dense<0.000000e+00> : vector<2x1024xf32>
    %16 = tpu.matmul %14, %15, %cst_14 {dimension_numbers = #tpu.dot_dimension_numbers<[1], [0], [0], [1], [0, 0, 1, 1], [], []>} : vector<2x32xf32>, vector<32x1024xf32>, vector<2x1024xf32> -> vector<2x1024xf32>
    %c0_15 = arith.constant 0 : index
    %c0_16 = arith.constant 0 : index
    %17 = vector.load %arg7[%c0_15, %c0_16] : memref<1x1024xf32, #tpu.memory_space<vmem>>, vector<1x1024xf32>
    %18 = vector.broadcast %17 : vector<1x1024xf32> to vector<2x1024xf32>
    %19 = arith.addf %16, %18 : vector<2x1024xf32>
    %c0_17 = arith.constant 0 : index
    %c0_18 = arith.constant 0 : index
    %20 = vector.load %arg8[%c0_17, %c0_18] : memref<2x1024xf32, #tpu.memory_space<vmem>>, vector<2x1024xf32>
    tpu.vector_store %arg8[%c0_17, %c0_18], %19 {strides = array<i32>} : memref<2x1024xf32, #tpu.memory_space<vmem>>, vector<2x1024xf32>,
    return
  }
  func.func @transform_0(%arg0: i32) -> (i32, i32) {
    %c0_i32 = arith.constant 0 : i32
    %c0_i32_0 = arith.constant 0 : i32
    return %arg0, %c0_i32 : i32, i32
  }
  func.func @transform_1(%arg0: i32) -> (i32, i32) {
    %c0_i32 = arith.constant 0 : i32
    %c0_i32_0 = arith.constant 0 : i32
    %c0_i32_1 = arith.constant 0 : i32
    return %c0_i32, %c0_i32_0 : i32, i32
  }
  func.func @transform_2(%arg0: i32) -> (i32, i32) {
    %c0_i32 = arith.constant 0 : i32
    %c0_i32_0 = arith.constant 0 : i32
    %c0_i32_1 = arith.constant 0 : i32
    return %c0_i32, %c0_i32_0 : i32, i32
  }
  func.func @transform_3(%arg0: i32) -> (i32, i32) {
    %c0_i32 = arith.constant 0 : i32
    %c0_i32_0 = arith.constant 0 : i32
    %c0_i32_1 = arith.constant 0 : i32
    return %c0_i32, %c0_i32_0 : i32, i32
  }
  func.func @transform_4(%arg0: i32) -> (i32, i32) {
    %c0_i32 = arith.constant 0 : i32
    %c0_i32_0 = arith.constant 0 : i32
    %c0_i32_1 = arith.constant 0 : i32
    return %c0_i32, %c0_i32_0 : i32, i32
  }
  func.func @transform_5(%arg0: i32) -> (i32, i32) {
    %c0_i32 = arith.constant 0 : i32
    %c0_i32_0 = arith.constant 0 : i32
    %c0_i32_1 = arith.constant 0 : i32
    return %c0_i32, %c0_i32_0 : i32, i32
  }
  func.func @transform_6(%arg0: i32) -> (i32, i32) {
    %c0_i32 = arith.constant 0 : i32
    %c0_i32_0 = arith.constant 0 : i32
    %c0_i32_1 = arith.constant 0 : i32
    return %c0_i32, %c0_i32_0 : i32, i32
  }
  func.func @transform_7(%arg0: i32) -> (i32, i32) {
    %c0_i32 = arith.constant 0 : i32
    %c0_i32_0 = arith.constant 0 : i32
    return %arg0, %c0_i32 : i32, i32
  }
}

</mosaic_0001>

<bundles_post_ra>
// kernel: autoencoder_forward.1
= control target key start
LH: loop header
LB: loop body
LE: loop exit
PB: predicated region body
PF: predicated region fallthrough
CT: control target
= control target key end

     0   :  { %v1320_v47 = vmov 1983009808   ;;  %v169_v49 = vlaneseq  ;;  %vm1322_vm0 = vmmov 0   ;;  %vm499_vm1 = vcmask 261120   ;;  %s1918_s1 = inlined_call_operand.vmem [shape: f32[1024,32], index: 1, kind: input, shape index: {}]   ;;  %s1919_s0 = inlined_call_operand.vmem [shape: f32[2,1024], index: 0, kind: input, shape index: {}]   ;;  %s1920_s3 = inlined_call_operand.vmem [shape: f32[32,32], index: 3, kind: input, shape index: {}]   ;;  %s1921_s5 = inlined_call_operand.vmem [shape: f32[32,1024], index: 5, kind: input, shape index: {}]   ;;  %s1922_s2 = inlined_call_operand.vmem [shape: f32[1,32], index: 2, kind: input, shape index: {}]   ;;  %s1923_s4 = inlined_call_operand.vmem [shape: f32[1,32], index: 4, kind: input, shape index: {}]   ;;  %s1924_s6 = inlined_call_operand.vmem [shape: f32[1,1024], index: 6, kind: input, shape index: {}]   ;;  %s1925_s7 = inlined_call_operand.vmem [shape: f32[2,1024], index: 7, kind: output, shape index: {}]  }
   0x1   :  { %v44_v0 = vld [vmem:[%s1918_s1 + $0x80] sm:$0xff]  ;;  %v45_v1 = vld [vmem:[%s1918_s1 + $0x88] sm:$0xff]  ;;  %v46_v11 = vld [vmem:[%s1918_s1 + $0x90] sm:$0xff]  ;;  %v167_v48 = vunpack.c.l.s4 %v1320_v47 }
   0x2   :  { %v28_v2 = vld [vmem:[%s1918_s1] sm:$0xff]  ;;  %v1148_v3 = vpack.c.bf16 %v45_v1, %v44_v0  ;;  %v29_v4 = vld [vmem:[%s1918_s1 + $0x8] sm:$0xff]  ;;  %v47_v13 = vld [vmem:[%s1918_s1 + $0x98] sm:$0xff]  ;;  %v1490_v0 = vshrl.u32 %v169_v49, 7 }
   0x3   :  { %v76_v5 = vld [vmem:[%s1918_s1 + $0x180] sm:$0xff]  ;;  %v77_v6 = vld [vmem:[%s1918_s1 + $0x188] sm:$0xff]  ;;  %v1150_v7 = vpack.c.bf16 %v29_v4, %v28_v2  ;;  %v30_v14 = vld [vmem:[%s1918_s1 + $0x10] sm:$0xff]  ;;  %v1152_v16 = vpack.c.bf16 %v47_v13, %v46_v11  ;;  %v168_v63 = vunpack.c.0.s8 %v167_v48 }
   0x4   :  { %v1180_v8 = vpack.c.bf16 %v77_v6, %v76_v5  ;;  %v60_v9 = vld [vmem:[%s1918_s1 + $0x100] sm:$0xff]  ;;  %v61_v10 = vld [vmem:[%s1918_s1 + $0x108] sm:$0xff]  ;;  %1149 = vmatprep.subr.bf16.mxu0 %v1148_v3  ;;  %v31_v15 = vld [vmem:[%s1918_s1 + $0x18] sm:$0xff] }
   0x5   :  { %v1182_v12 = vpack.c.bf16 %v61_v10, %v60_v9  ;;  %1151 = vmatpush3.bf16.msra.mxu0 %v1150_v7  ;;  %v1154_v17 = vpack.c.bf16 %v31_v15, %v30_v14  ;;  %v78_v18 = vld [vmem:[%s1918_s1 + $0x190] sm:$0xff]  ;;  %v79_v19 = vld [vmem:[%s1918_s1 + $0x198] sm:$0xff]  ;;  %v48_v23 = vld [vmem:[%s1918_s1 + $0xa0] sm:$0xff]  ;;  %v1517_v13 = vsub.s32 %v168_v63, %v1490_v0 }
   0x6   :  { %1181 = vmatprep.subr.bf16.mxu1 %v1180_v8  ;;  %v62_v20 = vld [vmem:[%s1918_s1 + $0x110] sm:$0xff]  ;;  %v1184_v21 = vpack.c.bf16 %v79_v19, %v78_v18  ;;  %v63_v22 = vld [vmem:[%s1918_s1 + $0x118] sm:$0xff]  ;;  %v49_v24 = vld [vmem:[%s1918_s1 + $0xa8] sm:$0xff]  ;;  %1153 = vmatprep.subr.bf16.mxu0 %v1152_v16 }
   0x7   :  { %1183 = vmatpush3.bf16.msra.mxu1 %v1182_v12  ;;  %v1186_v25 = vpack.c.bf16 %v63_v22, %v62_v20  ;;  %v1156_v26 = vpack.c.bf16 %v49_v24, %v48_v23  ;;  %v32_v27 = vld [vmem:[%s1918_s1 + $0x20] sm:$0xff]  ;;  %v33_v28 = vld [vmem:[%s1918_s1 + $0x28] sm:$0xff]  ;;  %v50_v35 = vld [vmem:[%s1918_s1 + $0xb0] sm:$0xff] }
   0x8   :  { %v80_v29 = vld [vmem:[%s1918_s1 + $0x1a0] sm:$0xff]  ;;  %1185 = vmatprep.subr.bf16.mxu1 %v1184_v21  ;;  %v81_v30 = vld [vmem:[%s1918_s1 + $0x1a8] sm:$0xff]  ;;  %v1158_v33 = vpack.c.bf16 %v33_v28, %v32_v27  ;;  %v51_v36 = vld [vmem:[%s1918_s1 + $0xb8] sm:$0xff] }
   0x9   :  { %v64_v31 = vld [vmem:[%s1918_s1 + $0x120] sm:$0xff]  ;;  %v65_v32 = vld [vmem:[%s1918_s1 + $0x128] sm:$0xff]  ;;  %1155 = vmatpush3.bf16.msra.mxu0 %v1154_v17  ;;  %v1188_v34 = vpack.c.bf16 %v81_v30, %v80_v29  ;;  %v34_v37 = vld [vmem:[%s1918_s1 + $0x30] sm:$0xff]  ;;  %v1160_v39 = vpack.c.bf16 %v51_v36, %v50_v35 }
   0xa   :  { %1157 = vmatprep.subr.bf16.mxu0 %v1156_v26  ;;  %v1190_v38 = vpack.c.bf16 %v65_v32, %v64_v31  ;;  %v35_v40 = vld [vmem:[%s1918_s1 + $0x38] sm:$0xff]  ;;  %v82_v41 = vld [vmem:[%s1918_s1 + $0x1b0] sm:$0xff]  ;;  %v52_v46 = vld [vmem:[%s1918_s1 + $0xc0] sm:$0xff] }
   0xb   :  { %1187 = vmatpush3.bf16.msra.mxu1 %v1186_v25  ;;  %v83_v42 = vld [vmem:[%s1918_s1 + $0x1b8] sm:$0xff]  ;;  %v66_v44 = vld [vmem:[%s1918_s1 + $0x130] sm:$0xff]  ;;  %v53_v50 = vld [vmem:[%s1918_s1 + $0xc8] sm:$0xff]  ;;  %v1162_v51 = vpack.c.bf16 %v35_v40, %v34_v37 }
   0xc   :  { %1189 = vmatprep.subr.bf16.mxu1 %v1188_v34  ;;  %v1192_v43 = vpack.c.bf16 %v83_v42, %v82_v41  ;;  %v67_v45 = vld [vmem:[%s1918_s1 + $0x138] sm:$0xff]  ;;  %v84_v52 = vld [vmem:[%s1918_s1 + $0x1c0] sm:$0xff]  ;;  %v85_v53 = vld [vmem:[%s1918_s1 + $0x1c8] sm:$0xff]  ;;  %v1164_v55 = vpack.c.bf16 %v53_v50, %v52_v46 }
   0xd   :  { %1159 = vmatpush3.bf16.msra.mxu0 %v1158_v33  ;;  %v1194_v54 = vpack.c.bf16 %v67_v45, %v66_v44  ;;  %v36_v56 = vld [vmem:[%s1918_s1 + $0x40] sm:$0xff]  ;;  %v37_v57 = vld [vmem:[%s1918_s1 + $0x48] sm:$0xff]  ;;  %v1196_v59 = vpack.c.bf16 %v85_v53, %v84_v52  ;;  %v54_v61 = vld [vmem:[%s1918_s1 + $0xd0] sm:$0xff] }
   0xe   :  { %1161 = vmatprep.subr.bf16.mxu0 %v1160_v39  ;;  %v68_v58 = vld [vmem:[%s1918_s1 + $0x140] sm:$0xff]  ;;  %v69_v60 = vld [vmem:[%s1918_s1 + $0x148] sm:$0xff]  ;;  %v55_v62 = vld [vmem:[%s1918_s1 + $0xd8] sm:$0xff]  ;;  %v1166_v3 = vpack.c.bf16 %v37_v57, %v36_v56 }
   0xf   :  { %1191 = vmatpush3.bf16.msra.mxu1 %v1190_v38  ;;  %v86_v1 = vld [vmem:[%s1918_s1 + $0x1d0] sm:$0xff]  ;;  %v87_v2 = vld [vmem:[%s1918_s1 + $0x1d8] sm:$0xff]  ;;  %v1198_v4 = vpack.c.bf16 %v69_v60, %v68_v58  ;;  %v1168_v5 = vpack.c.bf16 %v55_v62, %v54_v61  ;;  %v56_v11 = vld [vmem:[%s1918_s1 + $0xe0] sm:$0xff] }
  0x10   :  { %1193 = vmatprep.subr.bf16.mxu1 %v1192_v43  ;;  %v38_v6 = vld [vmem:[%s1918_s1 + $0x50] sm:$0xff]  ;;  %v39_v7 = vld [vmem:[%s1918_s1 + $0x58] sm:$0xff]  ;;  %v1200_v9 = vpack.c.bf16 %v87_v2, %v86_v1  ;;  %v57_v12 = vld [vmem:[%s1918_s1 + $0xe8] sm:$0xff] }
  0x11   :  { %1163 = vmatpush3.bf16.msra.mxu0 %v1162_v51  ;;  %v70_v8 = vld [vmem:[%s1918_s1 + $0x150] sm:$0xff]  ;;  %v71_v10 = vld [vmem:[%s1918_s1 + $0x158] sm:$0xff]  ;;  %v88_v14 = vld [vmem:[%s1918_s1 + $0x1e0] sm:$0xff]  ;;  %v1170_v16 = vpack.c.bf16 %v39_v7, %v38_v6  ;;  %v1172_v19 = vpack.c.bf16 %v57_v12, %v56_v11 }
  0x12   :  { %1165 = vmatprep.subr.bf16.mxu0 %v1164_v55  ;;  %v89_v15 = vld [vmem:[%s1918_s1 + $0x1e8] sm:$0xff]  ;;  %v40_v17 = vld [vmem:[%s1918_s1 + $0x60] sm:$0xff]  ;;  %v1202_v18 = vpack.c.bf16 %v71_v10, %v70_v8  ;;  %v58_v25 = vld [vmem:[%s1918_s1 + $0xf0] sm:$0xff] }
  0x13   :  { %1195 = vmatpush3.bf16.msra.mxu1 %v1194_v54  ;;  %v41_v20 = vld [vmem:[%s1918_s1 + $0x68] sm:$0xff]  ;;  %v72_v21 = vld [vmem:[%s1918_s1 + $0x160] sm:$0xff]  ;;  %v1204_v23 = vpack.c.bf16 %v89_v15, %v88_v14  ;;  %v59_v26 = vld [vmem:[%s1918_s1 + $0xf8] sm:$0xff] }
  0x14   :  { %1197 = vmatprep.subr.bf16.mxu1 %v1196_v59  ;;  %v26_v22 = vld [vmem:[%s1919_s0] sm:$0xff]  ;;  %v73_v24 = vld [vmem:[%s1918_s1 + $0x168] sm:$0xff]  ;;  %v90_v29 = vld [vmem:[%s1918_s1 + $0x1f0] sm:$0xff]  ;;  %v1174_v31 = vpack.c.bf16 %v41_v20, %v40_v17  ;;  %v1176_v36 = vpack.c.bf16 %v59_v26, %v58_v25 }
  0x15   :  { %1167 = vmatpush3.bf16.msra.mxu0 %v1166_v3  ;;  %v172_v27 = vrot.slane %v26_v22, %v1517_v13  ;;  %v165_v28 = vcombine.high %v26_v22, %v26_v22  ;;  %v91_v30 = vld [vmem:[%s1918_s1 + $0x1f8] sm:$0xff]  ;;  %v27_v32 = vld [vmem:[%s1919_s0 + $0x8] sm:$0xff]  ;;  %v1206_v35 = vpack.c.bf16 %v73_v24, %v72_v21  ;;  %v42_v37 = vld [vmem:[%s1918_s1 + $0x70] sm:$0xff] }
  0x16   :  { %1169 = vmatprep.subr.bf16.mxu0 %v1168_v5  ;;  %v43_v38 = vld [vmem:[%s1918_s1 + $0x78] sm:$0xff]  ;;  %v74_v39 = vld [vmem:[%s1918_s1 + $0x170] sm:$0xff]  ;;  %v1208_v40 = vpack.c.bf16 %v91_v30, %v90_v29  ;;  %v108_v42 = vld [vmem:[%s1918_s1 + $0x280] sm:$0xff]  ;;  %v182_v45 = vcombine.high %v27_v32, %v27_v32  ;;  %v1600_v58 = vrot.slane %v27_v32, %v1517_v13 }
  0x17   :  { %1199 = vmatpush3.bf16.msra.mxu1 %v1198_v4  ;;  %v180_v33 = vcombine.high %v172_v27, %v172_v27  ;;  %v179_v34 = vrot.slane %v165_v28, %v1517_v13  ;;  %v75_v41 = vld [vmem:[%s1918_s1 + $0x178] sm:$0xff]  ;;  %v109_v43 = vld [vmem:[%s1918_s1 + $0x288] sm:$0xff]  ;;  %v140_v46 = vld [vmem:[%s1918_s1 + $0x380] sm:$0xff]  ;;  %v1178_v48 = vpack.c.bf16 %v43_v38, %v42_v37 }
  0x18   :  { %1201 = vmatprep.subr.bf16.mxu1 %v1200_v9  ;;  %v141_v47 = vld [vmem:[%s1918_s1 + $0x388] sm:$0xff]  ;;  %v1210_v49 = vpack.c.bf16 %v75_v41, %v74_v39  ;;  %v1212_v50 = vpack.c.bf16 %v109_v43, %v108_v42  ;;  %v92_v51 = vld [vmem:[%s1918_s1 + $0x200] sm:$0xff]  ;;  %v110_v56 = vld [vmem:[%s1918_s1 + $0x290] sm:$0xff]  ;;  %v1609_v61 = vrot.slane %v182_v45, %v1517_v13  ;;  %v197_v9 = vcombine.high %v1600_v58, %v1600_v58 }
  0x19   :  { %1171 = vmatpush3.bf16.msra.mxu0 %v1170_v16  ;;  %271 = vmatprep.mubr.f32.mxu0 %v180_v33  ;;  %v181_v44 = vcombine.high %v179_v34, %v179_v34  ;;  %v93_v52 = vld [vmem:[%s1918_s1 + $0x208] sm:$0xff]  ;;  %v124_v53 = vld [vmem:[%s1918_s1 + $0x300] sm:$0xff]  ;;  %v1244_v54 = vpack.c.bf16 %v141_v47, %v140_v46  ;;  %v111_v57 = vld [vmem:[%s1918_s1 + $0x298] sm:$0xff] }
  0x1a   :  { %1173 = vmatprep.subr.bf16.mxu0 %v1172_v19  ;;  %v125_v55 = vld [vmem:[%s1918_s1 + $0x308] sm:$0xff]  ;;  %v142_v59 = vld [vmem:[%s1918_s1 + $0x390] sm:$0xff]  ;;  %v143_v60 = vld [vmem:[%s1918_s1 + $0x398] sm:$0xff]  ;;  %v1214_v62 = vpack.c.bf16 %v93_v52, %v92_v51  ;;  %v1216_v1 = vpack.c.bf16 %v111_v57, %v110_v56  ;;  %v198_v12 = vcombine.high %v1609_v61, %v1609_v61 }
  0x1b   :  { %1203 = vmatpush3.bf16.msra.mxu1 %v1202_v18  ;;  %341 = vmatprep.mubr.f32.mxu1 %v181_v44  ;;  %v1246_v63 = vpack.c.bf16 %v125_v55, %v124_v53  ;;  %v94_v2 = vld [vmem:[%s1918_s1 + $0x210] sm:$0xff]  ;;  %v95_v3 = vld [vmem:[%s1918_s1 + $0x218] sm:$0xff]  ;;  %v1248_v5 = vpack.c.bf16 %v143_v60, %v142_v59  ;;  %v112_v7 = vld [vmem:[%s1918_s1 + $0x2a0] sm:$0xff] }
  0x1c   :  { %1205 = vmatprep.subr.bf16.mxu1 %v1204_v23  ;;  %v126_v4 = vld [vmem:[%s1918_s1 + $0x310] sm:$0xff]  ;;  %v127_v6 = vld [vmem:[%s1918_s1 + $0x318] sm:$0xff]  ;;  %v113_v8 = vld [vmem:[%s1918_s1 + $0x2a8] sm:$0xff]  ;;  %v1218_v14 = vpack.c.bf16 %v95_v3, %v94_v2 }
  0x1d   :  { %1175 = vmatpush3.bf16.msra.mxu0 %v1174_v31  ;;  %v144_v10 = vld [vmem:[%s1918_s1 + $0x3a0] sm:$0xff]  ;;  %v145_v11 = vld [vmem:[%s1918_s1 + $0x3a8] sm:$0xff]  ;;  %v1250_v15 = vpack.c.bf16 %v127_v6, %v126_v4  ;;  %v1220_v16 = vpack.c.bf16 %v113_v8, %v112_v7  ;;  %v114_v22 = vld [vmem:[%s1918_s1 + $0x2b0] sm:$0xff] }
  0x1e   :  { %1177 = vmatprep.subr.bf16.mxu0 %v1176_v36  ;;  %v96_v17 = vld [vmem:[%s1918_s1 + $0x220] sm:$0xff]  ;;  %v97_v18 = vld [vmem:[%s1918_s1 + $0x228] sm:$0xff]  ;;  %v1252_v20 = vpack.c.bf16 %v145_v11, %v144_v10  ;;  %v115_v23 = vld [vmem:[%s1918_s1 + $0x2b8] sm:$0xff] }
  0x1f   :  { %1207 = vmatpush3.bf16.msra.mxu1 %v1206_v35  ;;  %v128_v19 = vld [vmem:[%s1918_s1 + $0x320] sm:$0xff]  ;;  %v129_v21 = vld [vmem:[%s1918_s1 + $0x328] sm:$0xff]  ;;  %v146_v24 = vld [vmem:[%s1918_s1 + $0x3b0] sm:$0xff]  ;;  %v1222_v26 = vpack.c.bf16 %v97_v18, %v96_v17  ;;  %v1224_v28 = vpack.c.bf16 %v115_v23, %v114_v22 }
  0x20   :  { %1209 = vmatprep.subr.bf16.mxu1 %v1208_v40  ;;  %v147_v25 = vld [vmem:[%s1918_s1 + $0x3b8] sm:$0xff]  ;;  %v98_v29 = vld [vmem:[%s1918_s1 + $0x230] sm:$0xff]  ;;  %v117_v35 = vld [vmem:[%s1918_s1 + $0x2c8] sm:$0xff] }
  0x21   :  { %1179 = vmatpush3.bf16.msra.mxu0 %v1178_v48  ;;  %v99_v30 = vld [vmem:[%s1918_s1 + $0x238] sm:$0xff]  ;;  %v130_v31 = vld [vmem:[%s1918_s1 + $0x330] sm:$0xff]  ;;  %v1256_v32 = vpack.c.bf16 %v147_v25, %v146_v24  ;;  %v148_v36 = vld [vmem:[%s1918_s1 + $0x3c0] sm:$0xff] }
  0x22   :  { %1213 = vmatprep.subr.bf16.mxu0 %v1212_v50  ;;  %v131_v33 = vld [vmem:[%s1918_s1 + $0x338] sm:$0xff]  ;;  %v149_v37 = vld [vmem:[%s1918_s1 + $0x3c8] sm:$0xff]  ;;  %v1226_v38 = vpack.c.bf16 %v99_v30, %v98_v29  ;;  %v100_v41 = vld [vmem:[%s1918_s1 + $0x240] sm:$0xff]  ;;  %v1323_v29 = vmov 0.0  }
  0x23   :  { %1211 = vmatpush3.bf16.msra.mxu1 %v1210_v49  ;;  %v1258_v39 = vpack.c.bf16 %v131_v33, %v130_v31  ;;  %v101_v42 = vld [vmem:[%s1918_s1 + $0x248] sm:$0xff]  ;;  %v132_v43 = vld [vmem:[%s1918_s1 + $0x340] sm:$0xff]  ;;  %v1260_v44 = vpack.c.bf16 %v149_v37, %v148_v36  ;;  %v118_v46 = vld [vmem:[%s1918_s1 + $0x2d0] sm:$0xff] }
  0x24   :  { %1245 = vmatprep.subr.bf16.mxu1 %v1244_v54  ;;  %272 = vmatmul.mubr.f32.vlgmr.msra.gmra.mrb[0].mxu0 %v172_v27  ;;  %v1254_v27 = vpack.c.bf16 %v129_v21, %v128_v19  ;;  %v133_v45 = vld [vmem:[%s1918_s1 + $0x348] sm:$0xff]  ;;  %v119_v47 = vld [vmem:[%s1918_s1 + $0x2d8] sm:$0xff]  ;;  %v150_v48 = vld [vmem:[%s1918_s1 + $0x3d0] sm:$0xff]  ;;  %v1230_v50 = vpack.c.bf16 %v101_v42, %v100_v41 }
  0x25   :  { %1215 = vmatpush3.bf16.msra.mxu0 %v1214_v62  ;;  %411 = vmatprep.mubr.f32.mxu0 %v197_v9  ;;  %v151_v49 = vld [vmem:[%s1918_s1 + $0x3d8] sm:$0xff]  ;;  %v1262_v51 = vpack.c.bf16 %v133_v45, %v132_v43  ;;  %v1232_v52 = vpack.c.bf16 %v119_v47, %v118_v46  ;;  %v102_v53 = vld [vmem:[%s1918_s1 + $0x250] sm:$0xff]  ;;  %v120_v59 = vld [vmem:[%s1918_s1 + $0x2e0] sm:$0xff] }
  0x26   :  { %342 = vmatmul.mubr.f32.vlgmr.msra.gmra.mrb[0].mxu1 %v179_v34  ;;  %1217 = vmatprep.subr.bf16.mxu0 %v1216_v1  ;;  %v116_v34 = vld [vmem:[%s1918_s1 + $0x2c0] sm:$0xff]  ;;  %v103_v54 = vld [vmem:[%s1918_s1 + $0x258] sm:$0xff]  ;;  %v134_v55 = vld [vmem:[%s1918_s1 + $0x350] sm:$0xff]  ;;  %v1264_v56 = vpack.c.bf16 %v151_v49, %v150_v48 }
  0x27   :  { %1247 = vmatpush3.bf16.msra.mxu1 %v1246_v63  ;;  %481 = vmatprep.mubr.f32.mxu1 %v198_v12  ;;  %v1228_v40 = vpack.c.bf16 %v117_v35, %v116_v34  ;;  %v135_v57 = vld [vmem:[%s1918_s1 + $0x358] sm:$0xff]  ;;  %v121_v60 = vld [vmem:[%s1918_s1 + $0x2e8] sm:$0xff]  ;;  %v152_v62 = vld [vmem:[%s1918_s1 + $0x3e0] sm:$0xff]  ;;  %v1234_v1 = vpack.c.bf16 %v103_v54, %v102_v53 }
  0x28   :  { %1249 = vmatprep.subr.bf16.mxu1 %v1248_v5  ;;  %v153_v63 = vld [vmem:[%s1918_s1 + $0x3e8] sm:$0xff]  ;;  %v1266_v2 = vpack.c.bf16 %v135_v57, %v134_v55  ;;  %v1236_v3 = vpack.c.bf16 %v121_v60, %v120_v59  ;;  %v104_v4 = vld [vmem:[%s1918_s1 + $0x260] sm:$0xff]  ;;  %v122_v9 = vld [vmem:[%s1918_s1 + $0x2f0] sm:$0xff] }
  0x29   :  { %1219 = vmatpush3.bf16.msra.mxu0 %v1218_v14  ;;  %v105_v5 = vld [vmem:[%s1918_s1 + $0x268] sm:$0xff]  ;;  %v136_v6 = vld [vmem:[%s1918_s1 + $0x360] sm:$0xff]  ;;  %v1268_v7 = vpack.c.bf16 %v153_v63, %v152_v62  ;;  %v123_v10 = vld [vmem:[%s1918_s1 + $0x2f8] sm:$0xff] }
  0x2a   :  { %1221 = vmatprep.subr.bf16.mxu0 %v1220_v16  ;;  %v137_v8 = vld [vmem:[%s1918_s1 + $0x368] sm:$0xff]  ;;  %v154_v11 = vld [vmem:[%s1918_s1 + $0x3f0] sm:$0xff]  ;;  %v155_v12 = vld [vmem:[%s1918_s1 + $0x3f8] sm:$0xff]  ;;  %v1238_v14 = vpack.c.bf16 %v105_v5, %v104_v4  ;;  %v1240_v16 = vpack.c.bf16 %v123_v10, %v122_v9 }
  0x2b   :  { %1251 = vmatpush3.bf16.msra.mxu1 %v1250_v15  ;;  %v1270_v15 = vpack.c.bf16 %v137_v8, %v136_v6  ;;  %v106_v17 = vld [vmem:[%s1918_s1 + $0x270] sm:$0xff]  ;;  %v107_v18 = vld [vmem:[%s1918_s1 + $0x278] sm:$0xff]  ;;  %v1272_v19 = vpack.c.bf16 %v155_v12, %v154_v11  ;;  %v488_v24 = vld [vmem:[%s1920_s3] sm:$0xff] }
  0x2c   :  { %1253 = vmatprep.subr.bf16.mxu1 %v1252_v20  ;;  %v138_v20 = vld [vmem:[%s1918_s1 + $0x370] sm:$0xff]  ;;  %v139_v21 = vld [vmem:[%s1918_s1 + $0x378] sm:$0xff]  ;;  %v1242_v22 = vpack.c.bf16 %v107_v18, %v106_v17  ;;  %v489_v25 = vld [vmem:[%s1920_s3 + $0x8] sm:$0xff] }
  0x2d   :  { %1223 = vmatpush3.bf16.msra.mxu0 %v1222_v26  ;;  %v1274_v23 = vpack.c.bf16 %v139_v21, %v138_v20  ;;  %v1277_v26 = vpack.c.bf16 %v489_v25, %v488_v24  ;;  %v575_v30 = vld [vmem:[%s1921_s5 + $0x8] sm:$0xff]  ;;  %v585_v34 = vld [vmem:[%s1921_s5 + $0x58] sm:$0xff]  ;;  %v574_v35 = vld [vmem:[%s1921_s5] sm:$0xff] }
  0x2e   :  { %1225 = vmatprep.subr.bf16.mxu0 %v1224_v28  ;;  %v490_v28 = vld [vmem:[%s1920_s3 + $0x10] sm:$0xff]  ;;  %v583_v31 = vld [vmem:[%s1921_s5 + $0x48] sm:$0xff]  ;;  %v582_v36 = vld [vmem:[%s1921_s5 + $0x40] sm:$0xff] }
  0x2f   :  { %1255 = vmatpush3.bf16.msra.mxu1 %v1254_v27  ;;  %v1321_v27 = vmov 0.0|0.0   ;;  %v1282_v33 = vpack.c.bf16 %v583_v31, %v575_v30  ;;  %v576_v55 = vld [vmem:[%s1921_s5 + $0x10] sm:$0xff]  ;;  %v591_v62 = vld [vmem:[%s1921_s5 + $0x88] sm:$0xff]  ;;  %v590_v4 = vld [vmem:[%s1921_s5 + $0x80] sm:$0xff] }
  0x30   :  { %1257 = vmatprep.subr.bf16.mxu1 %v1256_v32  ;;  %v577_v32 = vld [vmem:[%s1921_s5 + $0x18] sm:$0xff]  ;;  %v599_v63 = vld [vmem:[%s1921_s5 + $0xc8] sm:$0xff]  ;;  %v598_v5 = vld [vmem:[%s1921_s5 + $0xc0] sm:$0xff] }
  0x31   :  { %1227 = vmatpush3.bf16.msra.mxu0 %v1226_v38  ;;  %v1290_v37 = vpack.c.bf16 %v585_v34, %v577_v32  ;;  %v1284_v38 = vpack.c.bf16 %v582_v36, %v574_v35  ;;  %v592_v8 = vld [vmem:[%s1921_s5 + $0x90] sm:$0xff]  ;;  %v579_v11 = vld [vmem:[%s1921_s5 + $0x28] sm:$0xff]  ;;  %v986_v18 = vld [vmem:[%s1923_s4] ss:$0 sm:$0xff] }
  0x32   :  { %1229 = vmatprep.subr.bf16.mxu0 %v1228_v40  ;;  %v985_v40 = vld [vmem:[%s1922_s2] ss:$0 sm:$0xff]  ;;  %v600_v9 = vld [vmem:[%s1921_s5 + $0xd0] sm:$0xff]  ;;  %v587_v12 = vld [vmem:[%s1921_s5 + $0x68] sm:$0xff] }
  0x33   :  { %1259 = vmatpush3.bf16.msra.mxu1 %v1258_v39  ;;  %v1296_v10 = vpack.c.bf16 %v600_v9, %v592_v8  ;;  %v586_v20 = vld [vmem:[%s1921_s5 + $0x60] sm:$0xff]  ;;  %v580_v21 = vld [vmem:[%s1921_s5 + $0x30] sm:$0xff]  ;;  %v603_v25 = vld [vmem:[%s1921_s5 + $0xe8] sm:$0xff] }
  0x34   :  { %1261 = vmatprep.subr.bf16.mxu1 %v1260_v44  ;;  %v594_v31 = vld [vmem:[%s1921_s5 + $0xa0] sm:$0xff]  ;;  %v596_v36 = vld [vmem:[%s1921_s5 + $0xb0] sm:$0xff] }
  0x35   :  { %1231 = vmatpush3.bf16.msra.mxu0 %v1230_v50  ;;  %v602_v35 = vld [vmem:[%s1921_s5 + $0xe0] sm:$0xff] }
  0x36   :  { %1233 = vmatprep.subr.bf16.mxu0 %v1232_v52 }
  0x37   :  { %1263 = vmatpush3.bf16.msra.mxu1 %v1262_v51 }
  0x38   :  { %1265 = vmatprep.subr.bf16.mxu1 %v1264_v56  ;;  %v584_v56 = vld [vmem:[%s1921_s5 + $0x50] sm:$0xff] }
  0x39   :  { %1235 = vmatpush3.bf16.msra.mxu0 %v1234_v1  ;;  %v1292_v59 = vpack.c.bf16 %v584_v56, %v576_v55  ;;  %v593_v1 = vld [vmem:[%s1921_s5 + $0x98] sm:$0xff]  ;;  %v634_v55 = vsub.s32 6, %v1490_v0 }
  0x3a   :  { %1237 = vmatprep.subr.bf16.mxu0 %v1236_v3  ;;  %v601_v3 = vld [vmem:[%s1921_s5 + $0xd8] sm:$0xff] }
  0x3b   :  { %1267 = vmatpush3.bf16.msra.mxu1 %v1266_v2  ;;  %v1286_v2 = vpack.c.bf16 %v599_v63, %v591_v62  ;;  %v1294_v6 = vpack.c.bf16 %v601_v3, %v593_v1 }
  0x3c   :  { %1269 = vmatprep.subr.bf16.mxu1 %v1268_v7  ;;  %v1288_v7 = vpack.c.bf16 %v598_v5, %v590_v4 }
  0x3d   :  { %1239 = vmatpush3.bf16.msra.mxu0 %v1238_v14  ;;  %v581_v14 = vld [vmem:[%s1921_s5 + $0x38] sm:$0xff] }
  0x3e   :  { %1241 = vmatprep.subr.bf16.mxu0 %v1240_v16  ;;  %v589_v16 = vld [vmem:[%s1921_s5 + $0x78] sm:$0xff] }
  0x3f   :  { %1271 = vmatpush3.bf16.msra.mxu1 %v1270_v15  ;;  %v1298_v15 = vpack.c.bf16 %v587_v12, %v579_v11  ;;  %v1306_v17 = vpack.c.bf16 %v589_v16, %v581_v14 }
  0x40   :  { %1273 = vmatprep.subr.bf16.mxu1 %v1272_v19  ;;  %v578_v19 = vld [vmem:[%s1921_s5 + $0x20] sm:$0xff] }
  0x41   :  { %1243 = vmatpush3.bf16.msra.mxu0 %v1242_v22  ;;  %v588_v22 = vld [vmem:[%s1921_s5 + $0x70] sm:$0xff] }
  0x42   :  { %1276 = vmatprep.subr.bf16.mxu0 %v1321_v27  ;;  %v1308_v30 = vpack.c.bf16 %v588_v22, %v580_v21 }
  0x43   :  { %1275 = vmatpush3.bf16.msra.mxu1 %v1274_v23  ;;  %v595_v23 = vld [vmem:[%s1921_s5 + $0xa8] sm:$0xff] }
  0x44   :  { %412 = vmatmul.mubr.f32.vlgmr.msra.gmra.mrb[2].mxu0 %v1600_v58  ;;  %v491_v58 = vld [vmem:[%s1920_s3 + $0x18] sm:$0xff]  ;;  %1283 = vmatprep.subr.bf16.mxu1 %v1282_v33  ;;  %v1302_v33 = vpack.c.bf16 %v603_v25, %v595_v23 }
  0x45   :  { %1278 = vmatpush3.bf16.msra.mxu0 %v1277_v26  ;;  %1145 = vmatprep.mubr.msk.f32.mxu0 %vm1322_vm0, %v1323_v29  ;;  %v597_v26 = vld [vmem:[%s1921_s5 + $0xb8] sm:$0xff] }
  0x46   :  { %482 = vmatmul.mubr.f32.vlgmr.msra.gmra.mrb[2].mxu1 %v1609_v61  ;;  %1279 = vmatprep.subr.bf16.mxu0 %v1321_v27  ;;  %v1280_v61 = vpack.c.bf16 %v491_v58, %v490_v28  ;;  %v605_v27 = vld [vmem:[%s1921_s5 + $0xf8] sm:$0xff] }
  0x47   :  { %715 = vmatprep.mubr.f32.mxu1 %v1323_v29  ;;  %1285 = vmatpush1.bf16.msra.mxu1 %v1284_v38  ;;  %v1310_v34 = vpack.c.bf16 %v605_v27, %v597_v26  ;;  %v1304_v38 = vpack.c.bf16 %v602_v35, %v594_v31 }
  0x48   :  { %1287 = vmatprep.subr.bf16.mxu1 %v1286_v2 }
  0x49   :  { %1281 = vmatpush3.bf16.msra.mxu0 %v1280_v61  ;;  %v1300_v61 = vpack.c.bf16 %v586_v20, %v578_v19 }
  0x4a   :  { %1291 = vmatprep.subr.bf16.mxu0 %v1290_v37  ;;  %v604_v37 = vld [vmem:[%s1921_s5 + $0xf0] sm:$0xff] }
  0x4b   :  { %1289 = vmatpush1.bf16.msra.mxu1 %v1288_v7 }
  0x4c   :  { %1299 = vmatprep.subr.bf16.mxu1 %v1298_v15 }
  0xf7   :  { %v1024_v39 = vpop.f32.mrb[0].mxu0 }
  0xf8   :  { %v1025_v41 = vpop.f32.mrb[1].mxu0 }
  0xf9   :  { %v1059_v42 = vpop.f32.mrb[0].mxu1  ;;  %v1026_v43 = vadd.f32 %v1025_v41, %v1024_v39  ;;  %v1312_v39 = vpack.c.bf16 %v604_v37, %v596_v36  ;;  %v618_v41 = vsub.s32 2, %v1490_v0 }
  0xfa   :  { %v1060_v44 = vpop.f32.mrb[1].mxu1 }
  0xfb   :  { %v1061_v45 = vadd.f32 %v1060_v44, %v1059_v42  ;;  %v274_v46 = vadd.f32 %v1026_v43, %v985_v40  ;;  %v610_v40 = vsub.s32 0, %v1490_v0  ;;  %v606_v42 = vld [vmem:[%s1924_s6] sm:$0xff]  ;;  %v614_v43 = vsub.s32 1, %v1490_v0 }
  0xfc   :  { %v622_v44 = vsub.s32 3, %v1490_v0  ;;  %v635_v2 = vrot.slane %v606_v42, %v634_v55 }
  0xfd   :  { %v344_v47 = vadd.f32 %v1061_v45, %v274_v46  ;;  %v611_v45 = vrot.slane %v606_v42, %v610_v40  ;;  %v615_v46 = vrot.slane %v606_v42, %v614_v43 }
 0x117   :  { %v1094_v48 = vpop.f32.mrb[2].mxu0 }
 0x118   :  { %v1095_v49 = vpop.f32.mrb[3].mxu0 }
 0x119   :  { %v1129_v50 = vpop.f32.mrb[2].mxu1  ;;  %v1096_v51 = vadd.f32 %v1095_v49, %v1094_v48 }
 0x11a   :  { %v1130_v52 = vpop.f32.mrb[3].mxu1 }
 0x11b   :  { %v1131_v53 = vadd.f32 %v1130_v52, %v1129_v50  ;;  %v414_v54 = vadd.f32 %v1096_v51, %v344_v47  ;;  %v623_v47 = vrot.slane %v606_v42, %v622_v44 }
 0x11d   :  { %v484_v57 = vadd.f32 %v1131_v53, %v414_v54  ;;  %v626_v54 = vsub.s32 4, %v1490_v0 }
 0x11f   :  { %v487_v60 = vmax.f32 %v484_v57, 0.0  ;;  %v627_v1 = vrot.slane %v606_v42, %v626_v54 }
 0x121   :  { %1146 = vmatmul.mubr.msk.f32.vlgmr.msra.gmra.mrb[4].mxu0 %vm499_vm1, %v487_v60  ;;  %v638_v60 = vsub.s32 7, %v1490_v0 }
 0x122   :  { %1293 = vmatpush1.bf16.msra.mxu0 %v1292_v59  ;;  %786 = vmatprep.mubr.f32.mxu0 %v1323_v29  ;;  %v630_v59 = vsub.s32 5, %v1490_v0 }
 0x123   :  { %1295 = vmatprep.subr.bf16.mxu0 %v1294_v6  ;;  %v639_v6 = vrot.slane %v606_v42, %v638_v60 }
 0x124   :  { %v631_v5 = vrot.slane %v606_v42, %v630_v59 }
 0x126   :  { %1297 = vmatpush1.bf16.msra.mxu0 %v1296_v10 }
 0x127   :  { %1307 = vmatprep.subr.bf16.mxu0 %v1306_v17 }
 0x1f4   :  { %v569_v24 = vpop.f32.mrb[4].mxu0 }
 0x1f5   :  { %v570_v28 = vadd.f32 %v986_v18, %v569_v24  ;;  %v1147_v58 = vpop.f32.mrb[5].mxu0 }
 0x1f7   :  { %v573_v32 = vmax.f32 %v570_v28, 0.0 }
 0x1f9   :  { %988 = vmatmul.mubr.msk.f32.vlgmr.msra.gmra.mrb[4].mxu1 %vm499_vm1, %v573_v32  ;;  %989 = vmatmul.mubr.msk.f32.vlgmr.msra.gmra.mrb[6].mxu0 %vm499_vm1, %v573_v32 }
 0x1fa   :  { %1301 = vmatpush1.bf16.msra.mxu1 %v1300_v61  ;;  %1309 = vmatpush1.bf16.msra.mxu0 %v1308_v30 }
 0x1fb   :  { %1303 = vmatprep.subr.bf16.mxu1 %v1302_v33  ;;  %1311 = vmatprep.subr.bf16.mxu0 %v1310_v34 }
 0x1fc   :  { %857 = vmatprep.mubr.f32.mxu1 %v1323_v29  ;;  %928 = vmatprep.mubr.f32.mxu0 %v1323_v29  ;;  %v619_v29 = vrot.slane %v606_v42, %v618_v41 }
 0x1fe   :  { %1305 = vmatpush1.bf16.msra.mxu1 %v1304_v38  ;;  %1313 = vmatpush1.bf16.msra.mxu0 %v1312_v39 }
 0x201   :  { %990 = vmatmul.mubr.msk.f32.vlgmr.msra.gmra.mrb[6].mxu1 %vm499_vm1, %v573_v32  ;;  %991 = vmatmul.mubr.msk.f32.vlgmr.msra.gmra.mrb[8].mxu0 %vm499_vm1, %v573_v32 }
 0x2cc   :  { %v717_v48 = vpop.f32.mrb[4].mxu1  ;;  %v788_v49 = vpop.f32.mrb[6].mxu0 }
 0x2cd   :  { %v718_v50 = vadd.f32 %v717_v48, %v611_v45  ;;  %v789_v51 = vadd.f32 %v788_v49, %v619_v29  ;;  %v719_v52 = vpop.f32.mrb[5].mxu1  ;;  %v790_v53 = vpop.f32.mrb[7].mxu0 }
 0x2ce   :  { %v720_v56 = vadd.f32 %v719_v52, %v615_v46  ;;  %v791_v57 = vadd.f32 %v790_v53, %v623_v47 }
 0x2d0   :  { %v943_v62 = vcombine.low %v718_v50, %v720_v56  ;;  %v944_v63 = vcombine.low %v789_v51, %v791_v57 }
 0x2d2   :  { %v951_v3 = vrot.slane %v943_v62, %v1517_v13  ;;  %v958_v4 = vrot.slane %v944_v63, %v1517_v13 }
 0x2d4   :  { %v959_v7 = vcombine.low %v951_v3, %v958_v4  ;;  %v859_v8 = vpop.f32.mrb[6].mxu1  ;;  %v930_v9 = vpop.f32.mrb[8].mxu0 }
 0x2d5   :  { %v860_v10 = vadd.f32 %v859_v8, %v627_v1  ;;  %v931_v11 = vadd.f32 %v930_v9, %v635_v2  ;;  %v861_v12 = vpop.f32.mrb[7].mxu1  ;;  %v932_v14 = vpop.f32.mrb[9].mxu0 }
 0x2d6   :  { %979 = vst [vmem:[%s1925_s7] sm:$0xff] %v959_v7  ;;  %v862_v0 = vadd.f32 %v861_v12, %v631_v5  ;;  %v933_v15 = vadd.f32 %v932_v14, %v639_v6 }
 0x2d8   :  { %v960_v16 = vcombine.low %v860_v10, %v862_v0  ;;  %v961_v17 = vcombine.low %v931_v11, %v933_v15 }
 0x2da   :  { %v968_v18 = vrot.slane %v960_v16, %v1517_v13  ;;  %v975_v19 = vrot.slane %v961_v17, %v1517_v13 }
 0x2dc   :  { %v976_v20 = vcombine.low %v968_v18, %v975_v19 }
 0x2de   :  { %980 = vst [vmem:[%s1925_s7 + $0x8] sm:$0xff] %v976_v20 }

</bundles_post_ra>
